<compile_context>
chip_gen: v5e
topology: v5e:2x2
jax: 0.10.0
libtpu: 0.0.40
codegen_flags: <defaults>
</compile_context>

<pallas_src>
import functools

import jax
import jax.numpy as jnp
from jax import lax
from jax.experimental import pallas as pl
from jax.experimental.pallas import tpu as pltpu


def _round_up(x, m):
    return ((x + m - 1) // m) * m


def _exclusive_loss_kernel(x_ref, vt_ref, tgt_ref, logits_ref, perex_ref,
                           m_sc, l_sc, p_sc, *, t, num_classes):
    """One (batch_tile, class_tile) step of logits + online-softmax CE."""
    c = pl.program_id(1)
    n_c = pl.num_programs(1)
    b_tile, c_tile = logits_ref.shape

    # Init running-LSE / picked-logit accumulators at the first class tile.
    @pl.when(c == 0)
    def _():
        m_sc[...] = jnp.full_like(m_sc, -jnp.inf)
        l_sc[...] = jnp.zeros_like(l_sc)
        p_sc[...] = jnp.zeros_like(p_sc)

    # MXU: bf16 (B_TILE, D) @ bf16 (D, C_TILE) with f32 accumulation.
    logits = jnp.dot(x_ref[...], vt_ref[...],
                     preferred_element_type=jnp.float32) * t      # (B_TILE, C_TILE) f32
    logits_ref[...] = logits.astype(logits_ref.dtype)

    # Global class ids for this tile; mask out padded classes.
    class_ids = c * c_tile + lax.broadcasted_iota(
        jnp.int32, (b_tile, c_tile), 1)                            # (B_TILE, C_TILE)
    valid_cls = class_ids < num_classes
    masked = jnp.where(valid_cls, logits, -jnp.inf)

    # Online logsumexp across class tiles.
    tile_max = jnp.max(masked, axis=1, keepdims=True)              # (B_TILE, 1)
    m_prev = m_sc[...]
    m_new = jnp.maximum(m_prev, tile_max)
    alpha = jnp.exp(m_prev - m_new)
    l_sc[...] = alpha * l_sc[...] + jnp.sum(
        jnp.exp(masked - m_new), axis=1, keepdims=True)
    m_sc[...] = m_new

    # Picked target logit (each row's target falls in exactly one class tile).
    tgt = tgt_ref[:, 0:1]                                          # (B_TILE, 1) int32
    onehot = (class_ids == tgt) & valid_cls
    p_sc[...] += jnp.sum(jnp.where(onehot, logits, 0.0), axis=1, keepdims=True)

    # Finalize per-example loss at the last class tile (lane-dense slab).
    @pl.when(c == n_c - 1)
    def _():
        per_example = m_sc[...] + jnp.log(l_sc[...]) - p_sc[...]   # (B_TILE, 1)
        perex_ref[...] = jnp.broadcast_to(per_example, perex_ref.shape)


def exclusive_loss(inputs, V, targets, t=1.0, *, b_tile=None, c_tile=256):
    """inputs: (B, D) f32, V: (C, D) f32, targets: (B,) int.  Returns (loss, logits)."""
    B, D = inputs.shape
    C, D2 = V.shape
    assert D2 == D

    if b_tile is None:
        b_tile = min(128, _round_up(B, 16))       # bf16 sublane-friendly
    b_tile = _round_up(b_tile, 16)
    c_tile = min(_round_up(c_tile, 128), _round_up(C, 128))

    B_pad = _round_up(B, b_tile)
    C_pad = _round_up(C, c_tile)
    D_pad = _round_up(D, 128)

    # bf16 operands into the MXU (f32 accumulation inside the kernel).
    x = jnp.zeros((B_pad, D_pad), jnp.bfloat16).at[:B, :D].set(
        inputs.astype(jnp.bfloat16))
    # Pre-transposed (D, C) weight so the RHS enters the MXU in (K, N) layout.
    vt = jnp.zeros((D_pad, C_pad), jnp.bfloat16).at[:D, :C].set(
        V.astype(jnp.bfloat16).T)
    # Lane-dense target slab (avoids a lane-width-1 VMEM block).
    tgt = jnp.zeros((B_pad, 128), jnp.int32).at[:B, :].set(
        jnp.broadcast_to(targets.astype(jnp.int32)[:, None], (B, 128)))

    n_b = B_pad // b_tile
    n_c = C_pad // c_tile

    kernel = functools.partial(_exclusive_loss_kernel, t=float(t), num_classes=C)

    logits_pad, per_ex = pl.pallas_call(
        kernel,
        grid=(n_b, n_c),
        in_specs=[
            pl.BlockSpec((b_tile, D_pad), lambda b, c: (b, 0)),    # inputs
            pl.BlockSpec((D_pad, c_tile), lambda b, c: (0, c)),    # V^T, streamed over C
            pl.BlockSpec((b_tile, 128), lambda b, c: (b, 0)),      # targets slab
        ],
        out_specs=[
            pl.BlockSpec((b_tile, c_tile), lambda b, c: (b, c)),   # logits tile
            pl.BlockSpec((b_tile, 128), lambda b, c: (b, 0)),      # per-example loss slab
        ],
        out_shape=[
            jax.ShapeDtypeStruct((B_pad, C_pad), jnp.float32),
            jax.ShapeDtypeStruct((B_pad, 128), jnp.float32),
        ],
        scratch_shapes=[
            pltpu.VMEM((b_tile, 1), jnp.float32),   # running max
            pltpu.VMEM((b_tile, 1), jnp.float32),   # running sum-exp
            pltpu.VMEM((b_tile, 1), jnp.float32),   # picked target logit
        ],
        compiler_params=pltpu.CompilerParams(
            dimension_semantics=("parallel", "arbitrary"),
        ),
    )(x, vt, tgt)

    loss = jnp.sum(per_ex[:B, 0]) / B
    return loss, logits_pad[:B, :C]


def _reference(inputs, V, targets, t=1.0):
    # Models the same bf16-operand / f32-accumulate numerics as the kernel.
    x = inputs.astype(jnp.bfloat16).astype(jnp.float32)
    v = V.astype(jnp.bfloat16).astype(jnp.float32)
    logits = x @ v.T * t
    lse = jax.scipy.special.logsumexp(logits, axis=1)
    picked = jnp.take_along_axis(logits, targets[:, None], axis=1)[:, 0]
    return jnp.mean(lse - picked), logits


if __name__ == "__main__":
    # Small shapes consistent with the module forward; chosen so the kernel
    # exercises multiple batch tiles, multiple class tiles, and padding on
    # every axis (B=24 -> pad 32, D=96 -> pad 128, C=320 -> pad 384).
    B, D, C = 24, 96, 320
    t = 1.0

    key = jax.random.PRNGKey(0)
    k_x, k_v, k_t = jax.random.split(key, 3)

    inputs = jax.random.normal(k_x, (B, D), dtype=jnp.float32)
    # Module registers V as zeros; use a deterministic non-trivial V
    # (row-normalized, as Exclusive.backward produces in practice).
    V = jax.random.normal(k_v, (C, D), dtype=jnp.float32)
    V = V / jnp.linalg.norm(V, axis=1, keepdims=True)
    targets = jax.random.randint(k_t, (B,), 0, C, dtype=jnp.int32)

    loss, logits = exclusive_loss(inputs, V, targets, t=t,
                                  b_tile=16, c_tile=128)
    jax.block_until_ready((loss, logits))

    ref_loss, ref_logits = _reference(inputs, V, targets, t=t)
    assert logits.shape == (B, C)
    assert jnp.allclose(logits, ref_logits, atol=1e-3, rtol=1e-3), "logits mismatch"
    assert jnp.allclose(loss, ref_loss, atol=1e-3, rtol=1e-3), "loss mismatch"

    print("KERNEL_OK")
</pallas_src>

<mosaic_0001>
module attributes {stable_mosaic.version = 11 : i64} {
  func.func @_exclusive_loss_kernel(%arg0: i32, %arg1: i32, %arg2: memref<16x128xbf16, #tpu.memory_space<vmem>>, %arg3: memref<128x128xbf16, #tpu.memory_space<vmem>>, %arg4: memref<16x128xi32, #tpu.memory_space<vmem>>, %arg5: memref<16x128xf32, #tpu.memory_space<vmem>>, %arg6: memref<16x128xf32, #tpu.memory_space<vmem>>, %arg7: memref<16x1xf32, #tpu.memory_space<vmem>>, %arg8: memref<16x1xf32, #tpu.memory_space<vmem>>, %arg9: memref<16x1xf32, #tpu.memory_space<vmem>>) attributes {dimension_semantics = [#tpu.dimension_semantics<parallel>, #tpu.dimension_semantics<arbitrary>], iteration_bounds = array<i64: 2, 3>, scalar_prefetch = 0 : i64, scratch_operands = 3 : i64, tpu.core_type = #tpu.core_type<tc>, window_params = [{transform_indices = @transform_0, window_bounds = array<i64: 16, 128>}, {transform_indices = @transform_1, window_bounds = array<i64: 128, 128>}, {transform_indices = @transform_2, window_bounds = array<i64: 16, 128>}, {transform_indices = @transform_3, window_bounds = array<i64: 16, 128>}, {transform_indices = @transform_4, window_bounds = array<i64: 16, 128>}]} {
    %c0_i32 = arith.constant 0 : i32
    %0 = arith.cmpi eq, %arg1, %c0_i32 : i32
    %1 = arith.extui %0 : i1 to i32
    %c0_i32_0 = arith.constant 0 : i32
    %2 = arith.cmpi ne, %1, %c0_i32_0 : i32
    scf.if %2 {
      %cst_27 = arith.constant 0xFF800000 : f32
      %47 = vector.broadcast %cst_27 : f32 to vector<16x1xf32>
      %c0_28 = arith.constant 0 : index
      %c0_29 = arith.constant 0 : index
      %48 = vector.load %arg7[%c0_28, %c0_29] : memref<16x1xf32, #tpu.memory_space<vmem>>, vector<16x1xf32>
      tpu.vector_store %arg7[%c0_28, %c0_29], %47 {strides = array<i32>} : memref<16x1xf32, #tpu.memory_space<vmem>>, vector<16x1xf32>,
      %cst_30 = arith.constant 0.000000e+00 : f32
      %49 = vector.broadcast %cst_30 : f32 to vector<16x1xf32>
      %c0_31 = arith.constant 0 : index
      %c0_32 = arith.constant 0 : index
      %50 = vector.load %arg8[%c0_31, %c0_32] : memref<16x1xf32, #tpu.memory_space<vmem>>, vector<16x1xf32>
      tpu.vector_store %arg8[%c0_31, %c0_32], %49 {strides = array<i32>} : memref<16x1xf32, #tpu.memory_space<vmem>>, vector<16x1xf32>,
      %cst_33 = arith.constant 0.000000e+00 : f32
      %51 = vector.broadcast %cst_33 : f32 to vector<16x1xf32>
      %c0_34 = arith.constant 0 : index
      %c0_35 = arith.constant 0 : index
      %52 = vector.load %arg9[%c0_34, %c0_35] : memref<16x1xf32, #tpu.memory_space<vmem>>, vector<16x1xf32>
      tpu.vector_store %arg9[%c0_34, %c0_35], %51 {strides = array<i32>} : memref<16x1xf32, #tpu.memory_space<vmem>>, vector<16x1xf32>,
    } else {
    }
    %c0 = arith.constant 0 : index
    %c0_1 = arith.constant 0 : index
    %3 = vector.load %arg2[%c0, %c0_1] : memref<16x128xbf16, #tpu.memory_space<vmem>>, vector<16x128xbf16>
    %c0_2 = arith.constant 0 : index
    %c0_3 = arith.constant 0 : index
    %4 = vector.load %arg3[%c0_2, %c0_3] : memref<128x128xbf16, #tpu.memory_space<vmem>>, vector<128x128xbf16>
    %cst = arith.constant dense<0.000000e+00> : vector<16x128xf32>
    %5 = tpu.matmul %3, %4, %cst {dimension_numbers = #tpu.dot_dimension_numbers<[1], [0], [0], [1], [0, 0, 1, 1], [], []>} : vector<16x128xbf16>, vector<128x128xbf16>, vector<16x128xf32> -> vector<16x128xf32>
    %cst_4 = arith.constant 1.000000e+00 : f32
    %6 = vector.broadcast %cst_4 : f32 to vector<16x128xf32>
    %7 = arith.mulf %5, %6 : vector<16x128xf32>
    %c0_5 = arith.constant 0 : index
    %c0_6 = arith.constant 0 : index
    %8 = vector.load %arg5[%c0_5, %c0_6] : memref<16x128xf32, #tpu.memory_space<vmem>>, vector<16x128xf32>
    tpu.vector_store %arg5[%c0_5, %c0_6], %7 {strides = array<i32>} : memref<16x128xf32, #tpu.memory_space<vmem>>, vector<16x128xf32>,
    %c128_i32 = arith.constant 128 : i32
    %9 = arith.muli %arg1, %c128_i32 : i32
    %10 = tpu.iota {dimensions = array<i32: 1>} : vector<16x128xi32>
    %11 = vector.broadcast %9 : i32 to vector<16x128xi32>
    %12 = arith.addi %11, %10 : vector<16x128xi32>
    %c320_i32 = arith.constant 320 : i32
    %13 = vector.broadcast %c320_i32 : i32 to vector<16x128xi32>
    %14 = arith.cmpi slt, %12, %13 : vector<16x128xi32>
    %cst_7 = arith.constant 0xFF800000 : f32
    %15 = vector.broadcast %cst_7 : f32 to vector<16x128xf32>
    %16 = arith.select %14, %7, %15 : vector<16x128xi1>, vector<16x128xf32>
    %cst_8 = arith.constant dense<0xFF800000> : vector<16xf32>
    %17 = vector.multi_reduction <maximumf>, %16, %cst_8 [1] : vector<16x128xf32> to vector<16xf32>
    %18 = vector.shape_cast %17 : vector<16xf32> to vector<16x1xf32>
    %c0_9 = arith.constant 0 : index
    %c0_10 = arith.constant 0 : index
    %19 = vector.load %arg7[%c0_9, %c0_10] : memref<16x1xf32, #tpu.memory_space<vmem>>, vector<16x1xf32>
    %20 = arith.maximumf %19, %18 : vector<16x1xf32>
    %21 = arith.subf %19, %20 : vector<16x1xf32>
    %22 = math.exp %21 : vector<16x1xf32>
    %c0_11 = arith.constant 0 : index
    %c0_12 = arith.constant 0 : index
    %23 = vector.load %arg8[%c0_11, %c0_12] : memref<16x1xf32, #tpu.memory_space<vmem>>, vector<16x1xf32>
    %24 = arith.mulf %22, %23 : vector<16x1xf32>
    %25 = vector.broadcast %20 : vector<16x1xf32> to vector<16x128xf32>
    %26 = arith.subf %16, %25 : vector<16x128xf32>
    %27 = math.exp %26 : vector<16x128xf32>
    %cst_13 = arith.constant dense<0.000000e+00> : vector<16xf32>
    %28 = vector.multi_reduction <add>, %27, %cst_13 [1] : vector<16x128xf32> to vector<16xf32>
    %29 = vector.shape_cast %28 : vector<16xf32> to vector<16x1xf32>
    %30 = arith.addf %24, %29 : vector<16x1xf32>
    %c0_14 = arith.constant 0 : index
    %c0_15 = arith.constant 0 : index
    %31 = vector.load %arg8[%c0_14, %c0_15] : memref<16x1xf32, #tpu.memory_space<vmem>>, vector<16x1xf32>
    tpu.vector_store %arg8[%c0_14, %c0_15], %30 {strides = array<i32>} : memref<16x1xf32, #tpu.memory_space<vmem>>, vector<16x1xf32>,
    %c0_16 = arith.constant 0 : index
    %c0_17 = arith.constant 0 : index
    %32 = vector.load %arg7[%c0_16, %c0_17] : memref<16x1xf32, #tpu.memory_space<vmem>>, vector<16x1xf32>
    tpu.vector_store %arg7[%c0_16, %c0_17], %20 {strides = array<i32>} : memref<16x1xf32, #tpu.memory_space<vmem>>, vector<16x1xf32>,
    %c0_18 = arith.constant 0 : index
    %c0_19 = arith.constant 0 : index
    %33 = vector.load %arg4[%c0_18, %c0_19] : memref<16x128xi32, #tpu.memory_space<vmem>>, vector<16x1xi32>
    %34 = vector.broadcast %33 : vector<16x1xi32> to vector<16x128xi32>
    %35 = arith.cmpi eq, %12, %34 : vector<16x128xi32>
    %36 = arith.andi %35, %14 : vector<16x128xi1>
    %c0_20 = arith.constant 0 : index
    %c0_21 = arith.constant 0 : index
    %37 = vector.load %arg9[%c0_20, %c0_21] : memref<16x1xf32, #tpu.memory_space<vmem>>, vector<16x1xf32>
    %cst_22 = arith.constant 0.000000e+00 : f32
    %38 = vector.broadcast %cst_22 : f32 to vector<16x128xf32>
    %39 = arith.select %36, %7, %38 : vector<16x128xi1>, vector<16x128xf32>
    %cst_23 = arith.constant dense<0.000000e+00> : vector<16xf32>
    %40 = vector.multi_reduction <add>, %39, %cst_23 [1] : vector<16x128xf32> to vector<16xf32>
    %41 = vector.shape_cast %40 : vector<16xf32> to vector<16x1xf32>
    %42 = arith.addf %37, %41 : vector<16x1xf32>
    %c0_24 = arith.constant 0 : index
    %c0_25 = arith.constant 0 : index
    %43 = vector.load %arg9[%c0_24, %c0_25] : memref<16x1xf32, #tpu.memory_space<vmem>>, vector<16x1xf32>
    tpu.vector_store %arg9[%c0_24, %c0_25], %42 {strides = array<i32>} : memref<16x1xf32, #tpu.memory_space<vmem>>, vector<16x1xf32>,
    %c2_i32 = arith.constant 2 : i32
    %44 = arith.cmpi eq, %arg1, %c2_i32 : i32
    %45 = arith.extui %44 : i1 to i32
    %c0_i32_26 = arith.constant 0 : i32
    %46 = arith.cmpi ne, %45, %c0_i32_26 : i32
    scf.if %46 {
      %c0_27 = arith.constant 0 : index
      %c0_28 = arith.constant 0 : index
      %47 = vector.load %arg7[%c0_27, %c0_28] : memref<16x1xf32, #tpu.memory_space<vmem>>, vector<16x1xf32>
      %c0_29 = arith.constant 0 : index
      %c0_30 = arith.constant 0 : index
      %48 = vector.load %arg8[%c0_29, %c0_30] : memref<16x1xf32, #tpu.memory_space<vmem>>, vector<16x1xf32>
      %49 = math.log %48 : vector<16x1xf32>
      %50 = arith.addf %47, %49 : vector<16x1xf32>
      %c0_31 = arith.constant 0 : index
      %c0_32 = arith.constant 0 : index
      %51 = vector.load %arg9[%c0_31, %c0_32] : memref<16x1xf32, #tpu.memory_space<vmem>>, vector<16x1xf32>
      %52 = arith.subf %50, %51 : vector<16x1xf32>
      %53 = vector.shape_cast %52 : vector<16x1xf32> to vector<16x1xf32>
      %54 = vector.broadcast %53 : vector<16x1xf32> to vector<16x128xf32>
      %c0_33 = arith.constant 0 : index
      %c0_34 = arith.constant 0 : index
      %55 = vector.load %arg6[%c0_33, %c0_34] : memref<16x128xf32, #tpu.memory_space<vmem>>, vector<16x128xf32>
      tpu.vector_store %arg6[%c0_33, %c0_34], %54 {strides = array<i32>} : memref<16x128xf32, #tpu.memory_space<vmem>>, vector<16x128xf32>,
    } else {
    }
    return
  }
  func.func @transform_0(%arg0: i32, %arg1: i32) -> (i32, i32) {
    %c0_i32 = arith.constant 0 : i32
    %c0_i32_0 = arith.constant 0 : i32
    return %arg0, %c0_i32 : i32, i32
  }
  func.func @transform_1(%arg0: i32, %arg1: i32) -> (i32, i32) {
    %c0_i32 = arith.constant 0 : i32
    %c0_i32_0 = arith.constant 0 : i32
    return %c0_i32, %arg1 : i32, i32
  }
  func.func @transform_2(%arg0: i32, %arg1: i32) -> (i32, i32) {
    %c0_i32 = arith.constant 0 : i32
    %c0_i32_0 = arith.constant 0 : i32
    return %arg0, %c0_i32 : i32, i32
  }
  func.func @transform_3(%arg0: i32, %arg1: i32) -> (i32, i32) {
    %c0_i32 = arith.constant 0 : i32
    return %arg0, %arg1 : i32, i32
  }
  func.func @transform_4(%arg0: i32, %arg1: i32) -> (i32, i32) {
    %c0_i32 = arith.constant 0 : i32
    %c0_i32_0 = arith.constant 0 : i32
    return %arg0, %c0_i32 : i32, i32
  }
}

</mosaic_0001>

<bundles_post_ra>
// kernel: tpu_custom_call.1
= control target key start
LH: loop header
LB: loop body
LE: loop exit
PB: predicated region body
PF: predicated region fallthrough
CT: control target
= control target key end

     0   :  { %s1666_s0 = inlined_call_operand.hbm [shape: bf16[32,128], index: 0, kind: input, shape index: {}]   ;;  %s1667_s1 = inlined_call_operand.hbm [shape: bf16[128,384], index: 1, kind: input, shape index: {}]   ;;  %s1668_s2 = inlined_call_operand.hbm [shape: s32[32,128], index: 2, kind: input, shape index: {}]   ;;  %s1669_s3 = inlined_call_operand.hbm [shape: f32[32,384], index: 3, kind: output, shape index: {0}]   ;;  %s1670_s4 = inlined_call_operand.hbm [shape: f32[32,128], index: 4, kind: output, shape index: {1}]  }
   0x1   :  { %1691 = sst [smem:[#allocation35_spill]] %s1667_s1 }
   0x2   :  { %1692 = sst [smem:[#allocation36_spill]] %s1669_s3 }
   0x3   :  { %1693 = sst [smem:[#allocation37_spill]] %s1670_s4 }
   0x4   :  { %10 = vsyncpa [#allocation6], 0 }
   0x5   :  { %12 = vsyncpa [#allocation6 + $0x1], 0 }
   0x6   :  { %13 = vsyncpa [#allocation9], 0 }
   0x7   :  { %15 = vsyncpa [#allocation9 + $0x1], 0 }
   0x8   :  { %16 = vsyncpa [#allocation7], 0 }
   0x9   :  { %18 = vsyncpa [#allocation7 + $0x1], 0 }
   0xa   :  { %19 = vsyncpa [#allocation13], 0 }
   0xb   :  { %21 = vsyncpa [#allocation13 + $0x1], 0  ;;  %s1298_s15 = smov 0   ;;  %s1300_s16 = smov 0  }
   0xc   :  { %s1302_s17 = smov 0   ;;  %s1304_s18 = smov 0  }
   0xd   :  { %s1306_s19 = smov 0   ;;  %s1308_s20 = smov 0  }
   0xe   :  { %s1310_s21 = smov 0   ;;  %s1312_s22 = smov 0  }
   0xf   :  { %s1314_s23 = smov 0   ;;  %s1316_s24 = smov 0  }
  0x10   :  { %s1318_s25 = smov 0   ;;  %s1320_s26 = smov 0  }
  0x11   :  { %s1322_s27 = smov 0   ;;  %s1324_s28 = smov 0  }
  0x12 LB: > { %1694 = sst [smem:[#allocation19_spill]] %s1207_s15  ;;  %s36_s29 = sadd.s32 1, %s1251_s26  ;;  %s1259_s28 = sphi %s1324_s28, %s27_s28   ;;  %s1255_s27 = sphi %s1322_s27, %s1753_s27   ;;  %s1251_s26 = sphi %s1320_s26, %s1752_s26   ;;  %s1247_s25 = sphi %s1318_s25, %s1751_s25   ;;  %s1243_s24 = sphi %s1316_s24, %s1742_s24   ;;  %s1239_s23 = sphi %s1314_s23, %s1741_s23   ;;  %s1235_s22 = sphi %s1312_s22, %s1750_s22   ;;  %s1231_s21 = sphi %s1310_s21, %s1749_s21   ;;  %s1227_s20 = sphi %s1308_s20, %s1739_s20   ;;  %s1223_s19 = sphi %s1306_s19, %s1748_s19   ;;  %s1219_s18 = sphi %s1304_s18, %s1747_s18   ;;  %s1215_s17 = sphi %s1302_s17, %s1737_s17   ;;  %s1211_s16 = sphi %s1300_s16, %s1746_s16   ;;  %s1207_s15 = sphi %s1298_s15, %s1745_s15  }
  0x13   : > { %1695 = sst [smem:[#allocation20_spill]] %s1215_s17  ;;  %p54_p0 = scmp.eq.s32.totalorder %s1259_s28, 0 }
  0x14   : > { %1696 = sst [smem:[#allocation21_spill]] %s1227_s20  ;;  %p1370_p1 = scmp.ge.s32.totalorder %s36_s29, 3 }
  0x15   : > { %1697 = sst [smem:[#allocation22_spill]] %s1231_s21  ;;  %s72_s5 = sadd.s32 1, %s1227_s20 }
  0x16   : > { %1698 = sst [smem:[#allocation23_spill]] %s1239_s23  ;;  %p79_p2 = scmp.ne.s32.totalorder %s1227_s20, %s1223_s19 }
  0x17   : > { %1699 = sst [smem:[#allocation24_spill]] %s1247_s25  ;;  %p85_p3 = scmp.ne.s32.totalorder %s1223_s19, %s1219_s18 }
  0x18   : > { %1700 = sst [smem:[#allocation25_spill]] %s1251_s26  ;;  %s1755_s29 = smov (%p1370_p1, %s36_s29), 0 }
  0x19   : > { %1702 = sst [smem:[#allocation26_spill]] %s1755_s29  ;;  %p1385_p4 = por %p79_p2, %p54_p0 }
  0x1a   : > { %s1391_s7 = ssub.s32 %s1251_s26, %s1755_s29  ;;  %p1677_p5 = scmp.lt.s32.totalorder %s1259_s28, 6 }
  0x1b   : > { %p70_p6 = scmp.eq.s32.totalorder %s1391_s7, 0  ;;  %s211_s8 = sand.u32 1, %s1259_s28  }
  0x1c   : > { %s213_s10 = sand.u32 1, %s1227_s20   ;;  %s743_s12 = sshll.u32 %s1251_s26, 2 }
  0x1d   : > { %s1397_s9 = scalar_select %p70_p6, %s1227_s20, %s72_s5  }
  0x1e   : > { %s742_s11 = sshll.u32 %s213_s10, 6  ;;  %s1705_s1 = sld [smem:[#allocation35_spill]] }
  0x1f   : > { %1704 = sst [smem:[#allocation27_spill]] %s1397_s9  ;;  %s215_s29 = scalar_lea.vmem [#allocation8], %s742_s11 }
  0x20   : > { %s222_s25 = sshll.u32 %s215_s29, 4  ;;  %p828_p7 = pnand %p1677_p5, %p1385_p4  ;;  %s223_s25 = int_to_ptr.vmem [resolvable:$true] %s222_s25 }
  0x21   : > { %p747_p8 = scmp.ge.s32.totalorder %s1259_s28, 1  ;;  %p252_p9 = scmp.lt.s32.totalorder %s1259_s28, 7 }
  0x22   : > { %s1261_s29 = smov 192   ;;  %s1675_s5 = smov 64  }
  0x23   : > { %s1676_s10 = smov 4   ;;  %p1415_p10 = pnand %p747_p8, %p252_p9 }
  0x24   : > { %s219_s4 = scalar_lea.hbm %s1705_s1, %s743_s12  ;;  %s736_s11 = sadd.s32 4294967294, %s1259_s28  }
  0x25   : > { %s220_s3 = sshll.u32 %s219_s4, 4  ;;  %s1410_s4 = scalar_lea.sflag [#allocation9], %s211_s8  ;;  %s221_s3 = int_to_ptr.hbm [resolvable:$true] %s220_s3 }
  0x26   : > { %830 = dma.hbm_to_vmem [thread:$0]  (!%p828_p7), %s221_s3, 1024, %s223_s25, %s1410_s4, %s1261_s29, %s1675_s5, %s1676_s10  }
  0x27   : > { %s1420_s8 = sadd.s32 4294967295, %s1259_s28   ;;  %s39_s12 = sadd.s32 1, %s1255_s27 }
  0x28   : > { %s46_s13 = sadd.s32 1, %s1239_s23  ;;  %s1757_s12 = smov (!%p1370_p1, %s39_s12), %s1255_s27 }
  0x29   : > { %p53_p11 = scmp.ne.s32.totalorder %s1239_s23, %s1235_s22  ;;  %p59_p12 = scmp.ne.s32.totalorder %s1235_s22, %s1231_s21 }
  0x2a   : > { %p41_p13 = scmp.ge.s32.totalorder %s1757_s12, 2  ;;  %p60_p2 = scmp.eq.s32.totalorder %s1420_s8, 0 }
  0x2b   : > { %p1438_p4 = por %p54_p0, %p53_p11  ;;  %s126_s25 = sadd.s32 1, %s1215_s17 }
  0x2c   : > { %s1759_s12 = smov (%p41_p13, %s1757_s12), 0  ;;  %p1448_p1 = por %p60_p2, %p59_p12 }
  0x2d   : > { %1708 = sst [smem:[#allocation28_spill]] %s1759_s12  ;;  %p1455_p6 = por %p85_p3, %p60_p2 }
  0x2e   : > { %s43_s29 = ssub.s32 %s1255_s27, %s1759_s12  ;;  %p136_p0 = scmp.ne.s32.totalorder %s1215_s17, %s1211_s16 }
  0x2f   : > { %p44_p7 = scmp.eq.s32.totalorder %s43_s29, 0  ;;  %s123_s5 = sor.u32 %s1391_s7, %s43_s29 }
  0x30   : > { %p124_p8 = scmp.eq.s32.totalorder %s123_s5, 0  ;;  %p137_p9 = scmp.eq.s32.totalorder %s1420_s8, 5 }
  0x31   : > { %s1466_s10 = scalar_select %p44_p7, %s1239_s23, %s46_s13  }
  0x32   : > { %s1469_s1 = scalar_select %p124_p8, %s1215_s17, %s126_s25  }
  0x33   : > { %1711 = sst [smem:[#allocation29_spill]] %s1466_s10  ;;  %p1471_p13 = por %p137_p9, %p136_p0 }
  0x34   : > { %1712 = sst [smem:[#allocation30_spill]] %s1469_s1  ;;  %p142_p3 = scmp.ne.s32.totalorder %s1211_s16, %s1207_s15 }
  0x35   : > { %s1713_s18 = scalar_select %p1471_p13, 1, 0 }
  0x36   : > { %p143_p2 = scmp.eq.s32.totalorder %s736_s11, 5  ;;  %p1480_p5 = por %p137_p9, %p53_p11 }
  0x37   : > { %1714 = sst [smem:[#allocation31_spill]] %s1713_s18  ;;  %s189_s7 = sand.u32 1, %s1239_s23  }
  0x38   : > { %s1715_s12 = scalar_select %p1480_p5, 1, 0 }
  0x39   : > { %s801_s5 = sshll.u32 %s1255_s27, 3  ;;  %p1486_p7 = por %p143_p2, %p142_p3 }
  0x3a   : > { %1716 = sst [smem:[#allocation32_spill]] %s1715_s12  ;;  %p1493_p8 = por %p143_p2, %p59_p12 }
  0x3b   : > { %s1717_s13 = scalar_select %p1486_p7, 1, 0 }
  0x3c   : > { %s1719_s25 = scalar_select %p1493_p8, 1, 0 }
  0x3d   : > { %1718 = sst [smem:[#allocation33_spill]] %s1717_s13  ;;  %s739_s29 = sshll.u32 %s189_s7, 3 }
  0x3e   : > { %1720 = sst [smem:[#allocation34_spill]] %s1719_s25  ;;  %s198_s11 = scalar_lea.hbm %s1666_s0, %s801_s5 }
  0x3f   : > { %s199_s9 = sshll.u32 %s198_s11, 4  ;;  %s193_s20 = scalar_lea.vmem [#allocation5], %s739_s29  ;;  %s200_s9 = int_to_ptr.hbm [resolvable:$true] %s199_s9 }
  0x40   : > { %s201_s1 = sshll.u32 %s193_s20, 4  ;;  %p1721_p11 = scmp.lt.s32.totalorder %s1259_s28, 6  ;;  %s202_s1 = int_to_ptr.vmem [resolvable:$true] %s201_s1 }
  0x41   : > { %s744_s23 = sshll.u32 %s189_s7, 4  ;;  %s802_s17 = sshll.u32 %s1255_s27, 4 }
  0x42   : > { %p825_p0 = pnand %p1721_p11, %p1438_p4  ;;  %s241_s25 = scalar_lea.hbm %s1668_s2, %s802_s17 }
  0x43   : > { %s190_s15 = scalar_lea.sflag [#allocation6], %s189_s7  ;;  %s1722_s12 = smov 4  }
  0x44   : > { %s1723_s18 = smov 64   ;;  %s242_s26 = sshll.u32 %s241_s25, 4  ;;  %s243_s26 = int_to_ptr.hbm [resolvable:$true] %s242_s26 }
  0x45   : > { %827 = dma.hbm_to_vmem [thread:$0]  (!%p825_p0), %s200_s9, 128, %s202_s1, %s190_s15, %s1723_s18, %s1723_s18, %s1722_s12  }
  0x46   : > { %s236_s10 = scalar_lea.vmem [#allocation10], %s744_s23  ;;  %s1264_s5 = smov 128  }
  0x47   : > { %s244_s20 = sshll.u32 %s236_s10, 4  ;;  %s1265_s3 = smov 8   ;;  %s245_s20 = int_to_ptr.vmem [resolvable:$true] %s244_s20 }
  0x48   : > { %833 = dma.hbm_to_vmem [thread:$0]  (!%p825_p0), %s243_s26, 256, %s245_s20, %s1410_s4, %s1264_s5, %s1264_s5, %s1265_s3  }
  0x49   : > { %256 = sbr.rel (%p1415_p10) target bundleno = 814 (0x32e), region = 32  ;;  %s1515_s21 = sand.u32 (!%p1415_p10), 1, %s1235_s22  }
  0x4a   : > { %s748_s17 = sshll.u32 (!%p1415_p10), %s1515_s21, 3  ;;  %s259_s7 = scalar_lea.sflag (!%p1415_p10), [#allocation6], %s1515_s21 }
  0x4b   : > { %s1519_s1 = scalar_lea.vmem (!%p1415_p10), [#allocation5], %s748_s17 }
  0x4e   : > { %1186 = dma.done.wait (%p1448_p1), %s259_s7, 128  }
  0x4f   : > { %1188 = vsyncadd (%p1448_p1), %s259_s7, 4294967168  ;;  %s268_s15 = sand.u32 1, %s1420_s8   ;;  %s270_s23 = sand.u32 1, %s1223_s19  }
  0x50   : > { %s749_s9 = sshll.u32 %s270_s23, 6  ;;  %s269_s4 = scalar_lea.sflag [#allocation9], %s268_s15 }
  0x51   : > { %s1527_s6 = scalar_lea.vmem [#allocation8], %s749_s9 }
  0x52   : > { %1190 = dma.done.wait (%p1455_p6), %s269_s4, 1024  }
  0x53   : > { %1192 = vsyncadd (%p1455_p6), %s269_s4, 4294966272  ;;  %s750_s12 = sshll.u32 %s1515_s21, 4 }
  0x54   : > { %s1534_s18 = scalar_lea.vmem [#allocation10], %s750_s12 }
  0x55   : > { %1194 = dma.done.wait (%p1448_p1), %s269_s4, 256  }
  0x56   : > { %1196 = vsyncadd (%p1448_p1), %s269_s4, 4294967040  ;;  %s313_s8 = sand.u32 1, %s1211_s16   ;;  %s1545_s29 = scalar_lea.vmem [#allocation12], %s750_s12 }
  0x57   : > { %s751_s13 = sshll.u32 %s313_s8, 4  ;;  %p753_p10 = scmp.ne.s32.totalorder %s1243_s24, 0 }
  0x58   : > { %s1543_s25 = scalar_lea.vmem [#allocation11], %s751_s13 }
  0x59   : > { %330 = sbr.rel (%p753_p10) target bundleno = 101 (0x65), region = 48 }
  0x5e   : > { %vm331_vm0 = vcmask 7168   ;;  %v1266_v0 = vmov -inf   ;;  %v1267_v1 = vmov 0.0  }
  0x5f   : > { %332 = vst.msk [vmem:[#allocation2] sm:$0xff] %vm331_vm0, %v1266_v0 }
  0x60   : > { %333 = vst.msk [vmem:[#allocation2 + $0x8] sm:$0xff] %vm331_vm0, %v1266_v0 }
  0x61   : > { %334 = vst.msk [vmem:[#allocation3] sm:$0xff] %vm331_vm0, %v1267_v1 }
  0x62   : > { %335 = vst.msk [vmem:[#allocation3 + $0x8] sm:$0xff] %vm331_vm0, %v1267_v1 }
  0x63   : > { %336 = vst.msk [vmem:[#allocation4] sm:$0xff] %vm331_vm0, %v1267_v1 }
  0x64   : > { %337 = vst.msk [vmem:[#allocation4 + $0x8] sm:$0xff] %vm331_vm0, %v1267_v1 }
  0x65 PF: > { %v811_v2 = vld [vmem:[%s1527_s6 + $0x38] sm:$0xff]  ;;  %v810_v3 = vld [vmem:[%s1527_s6 + $0x30] sm:$0xff]  ;;  %v1268_v4 = vmov 0   ;;  %v809_v6 = vld [vmem:[%s1527_s6 + $0x28] sm:$0xff]  ;;  %v427_v15 = vlaneseq  ;;  %s790_s30 = sshll.u32 %s1243_s24, 7  ;;  %vm474_vm6 = vcmask 7168  }
  0x66   : > { %410 = vmatpush.bf16.msra.mxu0 %v811_v2  ;;  %968 = vset.pattern.permute.xlu2 %v1268_v4  ;;  %v479_v5 = vld [vmem:[%s1534_s18] sm:$0xff]  ;;  %v480_v7 = vld [vmem:[%s1534_s18 + $0x8] sm:$0xff]  ;;  %v429_v17 = vstv %s790_s30  ;;  %p791_p12 = scmp.ne.s32.totalorder %s1243_s24, 2 }
  0x67   : > { %967 = vset.pattern.permute.xlu1 %v1268_v4  ;;  %969 = vset.pattern.permute.xlu0 %v1268_v4  ;;  %v808_v8 = vld [vmem:[%s1527_s6 + $0x20] sm:$0xff]  ;;  %v807_v9 = vld [vmem:[%s1527_s6 + $0x18] sm:$0xff]  ;;  %v806_v10 = vld [vmem:[%s1527_s6 + $0x10] sm:$0xff]  ;;  %v428_v16 = vand.u32 127, %v427_v15 }
  0x68   : > { %482 = vperm.xlu2 %968, %v479_v5   ;;  %v805_v11 = vld [vmem:[%s1527_s6 + $0x8] sm:$0xff]  ;;  %v804_v12 = vld [vmem:[%s1527_s6] sm:$0xff]  ;;  %v803_v13 = vld [vmem:[%s1519_s1] sm:$0xff] }
  0x69   : > { %v430_v19 = vadd.s32 %v429_v17, %v428_v16  ;;  %v438_v28 = vld [vmem:[#allocation2] sm:$0xff]  ;;  %v439_v34 = vld [vmem:[#allocation2 + $0x8] sm:$0xff]  ;;  %v448_v49 = vld [vmem:[#allocation3] sm:$0xff] }
  0x6a   : > { %411 = vmatpush.bf16.msra.mxu0 %v810_v3  ;;  %v491_v27 = vld [vmem:[#allocation4] sm:$0xff]  ;;  %v449_v54 = vld [vmem:[#allocation3 + $0x8] sm:$0xff] }
  0x6b   : > { %vm431_vm2 = vcmp.lt.s32.totalorder %v430_v19, 320  ;;  %v492_v55 = vld [vmem:[#allocation4 + $0x8] sm:$0xff] }
  0x6e   : > { %412 = vmatpush.bf16.msra.mxu0 %v809_v6 }
  0x70   : > { %485 = vperm.xlu2 %968, %v480_v7  }
  0x72   : > { %413 = vmatpush.bf16.msra.mxu0 %v808_v8 }
  0x76   : > { %414 = vmatpush.bf16.msra.mxu0 %v807_v9 }
  0x7a   : > { %415 = vmatpush.bf16.msra.mxu0 %v806_v10 }
  0x7e   : > { %416 = vmatpush.bf16.msra.mxu0 %v805_v11 }
  0x82   : > { %417 = vmatpush.bf16.msra.mxu0 %v804_v12 }
  0x85   : > { %418 = vmatmul.bf16.vlgmr.msra.gmra.mxu0 %v803_v13 }
  0xc2   : > { %v483_v14 = vpop.permute.xlu2 %482 }
  0xc3   : > { %vm487_vm4 = vcmp.eq.s32.totalorder %v430_v19, %v483_v14 }
  0xc4   : > { %vm489_vm5 = vmand %vm487_vm4, %vm431_vm2 }
  0xca   : > { %v486_v18 = vpop.permute.xlu2 %485 }
  0xcb   : > { %vm488_vm1 = vcmp.eq.s32.totalorder %v430_v19, %v486_v18 }
  0xcc   : > { %vm1560_vm3 = vmand %vm488_vm1, %vm431_vm2 }
 0x102   : > { %v419_v21 = vpop.f32.mrf.mxu0 }
 0x103   : > { %424 = vst [vmem:[%s1543_s25] sm:$0xff] %v419_v21  ;;  %v493_v22 = vsel %vm489_vm5, %v419_v21, 0.0  ;;  %v432_v23 = vsel %vm431_vm2, %v419_v21, -inf }
 0x104   : > { %495 = vadd.xlane.f32.xlu2 %v493_v22  ;;  %434 = vmax.xlane.f32.xlu0 %v432_v23 }
 0x10a   : > { %v421_v24 = vpop.f32.mrf.mxu0 }
 0x10b   : > { %425 = vst [vmem:[%s1543_s25 + $0x8] sm:$0xff] %v421_v24  ;;  %v433_v25 = vsel %vm431_vm2, %v421_v24, -inf  ;;  %v494_v26 = vsel %vm1560_vm3, %v421_v24, 0.0 }
 0x10c   : > { %436 = vmax.xlane.f32.xlu0 %v433_v25 }
 0x177   : > { %v496_v29 = vpop.xlane.xlu2 %495  ;;  %v435_v30 = vpop.xlane.xlu0 %434 }
 0x178   : > { %v499_v31 = vadd.f32 %v496_v29, %v491_v27  ;;  %v440_v32 = vmax.f32 %v438_v28, %v435_v30 }
 0x17a   : > { %501 = vst.msk [vmem:[#allocation4] sm:$0xff] %vm474_vm6, %v499_v31  ;;  %v442_v33 = vsub.f32 %v438_v28, %v440_v32  ;;  %454 = vperm.xlu1 %967, %v440_v32  }
 0x17b   : > { %477 = vst.msk [vmem:[#allocation2] sm:$0xff] %vm474_vm6, %v440_v32 }
 0x17c   : > { %v444_v46 = vmul.f32 1.442695, %v442_v33 }
 0x17f   : > { %v437_v35 = vpop.xlane.xlu0 %436 }
 0x180   : > { %v441_v36 = vmax.f32 %v439_v34, %v437_v35 }
 0x182   : > { %v443_v37 = vsub.f32 %v439_v34, %v441_v36  ;;  %478 = vst.msk [vmem:[#allocation2 + $0x8] sm:$0xff] %vm474_vm6, %v441_v36  ;;  %459 = vperm.xlu1 %967, %v441_v36  }
 0x184   : > { %v446_v47 = vmul.f32 1.442695, %v443_v37 }
 0x1ec   : > { %v455_v38 = vpop.permute.xlu1 %454 }
 0x1ed   : > { %v462_v39 = vsub.f32 %v432_v23, %v455_v38 }
 0x1ef   : > { %v464_v40 = vmul.f32 1.442695, %v462_v39 }
 0x1f1   : > { %970 = vpow2.f32 %v464_v40 }
 0x1f4   : > { %v460_v41 = vpop.permute.xlu1 %459 }
 0x1f5   : > { %v463_v42 = vsub.f32 %v433_v25, %v460_v41 }
 0x1f7   : > { %v971_v43 = vpop.eup %970  ;;  %v466_v44 = vmul.f32 1.442695, %v463_v42 }
 0x1f8   : > { %468 = vadd.xlane.f32.xlu0 %v971_v43 }
 0x1f9   : > { %972 = vpow2.f32 %v466_v44 }
 0x1fa   : > { %974 = vpow2.f32 %v444_v46 }
 0x1fb   : > { %976 = vpow2.f32 %v446_v47 }
 0x1ff   : > { %v973_v45 = vpop.eup %972 }
 0x200   : > { %497 = vadd.xlane.f32.xlu0 %v494_v26  ;;  %470 = vadd.xlane.f32.xlu1 %v973_v45  ;;  %v975_v48 = vpop.eup %974 }
 0x201   : > { %v450_v50 = vmul.f32 %v975_v48, %v448_v49  ;;  %v977_v53 = vpop.eup %976 }
 0x202   : > { %v451_v56 = vmul.f32 %v977_v53, %v449_v54 }
 0x26b   : > { %v469_v51 = vpop.xlane.xlu0 %468 }
 0x26c   : > { %v472_v52 = vadd.f32 %v469_v51, %v450_v50 }
 0x26e   : > { %475 = vst.msk [vmem:[#allocation3] sm:$0xff] %vm474_vm6, %v472_v52 }
 0x273   : > { %v471_v57 = vpop.xlane.xlu1 %470  ;;  %v498_v58 = vpop.xlane.xlu0 %497  ;;  %506 = sbr.rel (%p791_p12) target bundleno = 770 (0x302), region = 52 }
 0x274   : > { %v473_v59 = vadd.f32 %v471_v57, %v451_v56  ;;  %v500_v60 = vadd.f32 %v498_v58, %v492_v55 }
 0x276   : > { %476 = vst.msk [vmem:[#allocation3 + $0x8] sm:$0xff] %vm474_vm6, %v473_v59 }
 0x277   : > { %502 = vst.msk [vmem:[#allocation4 + $0x8] sm:$0xff] %vm474_vm6, %v500_v60 }
 0x278   : > { %v509_v61 = vld [vmem:[#allocation3] sm:$0xff]  ;;  %v1269_v62 = vmov 0   ;;  %v507_v1 = vld [vmem:[#allocation2] sm:$0xff]  ;;  %v508_v7 = vld [vmem:[#allocation2 + $0x8] sm:$0xff] }
 0x279   : > { %978 = vset.pattern.permute.xlu0 %v1269_v62  ;;  %979 = vlog2.f32 %v509_v61  ;;  %v517_v4 = vld [vmem:[#allocation4] sm:$0xff] }
 0x27d   : > { %v510_v63 = vld [vmem:[#allocation3 + $0x8] sm:$0xff] }
 0x27e   : > { %981 = vlog2.f32 %v510_v63  ;;  %v518_v10 = vld [vmem:[#allocation4 + $0x8] sm:$0xff] }
 0x27f   : > { %v980_v0 = vpop.eup %979 }
 0x280   : > { %v512_v3 = vmul.f32 0.6931472, %v980_v0 }
 0x282   : > { %v515_v5 = vadd.f32 %v512_v3, %v507_v1 }
 0x284   : > { %v982_v2 = vpop.eup %981  ;;  %v519_v8 = vsub.f32 %v515_v5, %v517_v4 }
 0x285   : > { %v514_v6 = vmul.f32 0.6931472, %v982_v2 }
 0x286   : > { %523 = vperm.xlu0 %978, %v519_v8  }
 0x287   : > { %v516_v9 = vadd.f32 %v514_v6, %v508_v7 }
 0x289   : > { %v520_v11 = vsub.f32 %v516_v9, %v518_v10 }
 0x28e   : > { %528 = vperm.xlu0 %978, %v520_v11  }
 0x2f8   : > { %v524_v12 = vpop.permute.xlu0 %523 }
 0x2f9   : > { %531 = vst [vmem:[%s1545_s29] sm:$0xff] %v524_v12 }
 0x300   : > { %v529_v13 = vpop.permute.xlu0 %528 }
 0x301   : > { %532 = vst [vmem:[%s1545_s29 + $0x8] sm:$0xff] %v529_v13 }
 0x302 PF: > { %s1726_s14 = sld [smem:[#allocation24_spill]]  ;;  %s553_s10 = sshll.u32 %s1543_s25, 4  ;;  %s554_s10 = int_to_ptr.vmem [resolvable:$true] %s553_s10 }
 0x303   : > { %s1728_s7 = sld [smem:[#allocation36_spill]]  ;;  %s534_s9 = scalar_lea.sflag [#allocation7], %s313_s8 }
 0x308   : > { %s813_s26 = smul.u32 6, %s1726_s14  ;;  %s812_s23 = sshll.u32 %s1726_s14, 4 }
 0x309   : > { %s1093_s18 = scalar_lea.hbm %s1728_s7, 96 }
 0x30a   : > { %s550_s20 = sadd.s32 %s1243_s24, %s813_s26 }
 0x30b   : > { %s796_s5 = sshll.u32 %s550_s20, 3 }
 0x30c   : > { %s552_s1 = scalar_lea.hbm %s1728_s7, %s796_s5 }
 0x30d   : > { %s555_s15 = sshll.u32 %s552_s1, 4  ;;  %s556_s15 = int_to_ptr.hbm [resolvable:$true] %s555_s15 }
 0x30e   : > { %s1087_s4 = sshra.s32 %s556_s15, 4  ;;  %s1088_s4 = int_to_ptr.hbm [resolvable:$true] %s1087_s4 }
 0x30f   : > { %s1089_s6 = scalar_lea.hbm %s1088_s4, 16  ;;  %p1094_p9 = scmp.lt.s32.totalorder %s1088_s4, %s1728_s7 }
 0x310   : > { %p1090_p4 = scmp.ne.s32.totalorder %s1088_s4, %s1089_s6  ;;  %p1095_p3 = scmp.lt.s32.totalorder %s1093_s18, %s1089_s6 }
 0x312   : > { %p1091_p1 = pnand %p1090_p4, %p1471_p13  ;;  %p1096_p2 = por %p1095_p3, %p1094_p9 }
 0x314   : > { %p1092_p6 = pneg %p1091_p1 }
 0x316   : > { %p1097_p11 = pnand %p1096_p2, %p1092_p6 }
 0x318   : > { %1100 = shalt.err (!%p1097_p11)
}
 0x319   : > { %s1270_s8 = smov 128   ;;  %s1271_s14 = smov 384  }
 0x31a   : > { %s1272_s26 = smov 8   ;;  %s1730_s3 = sld [smem:[#allocation37_spill]] }
 0x31b   : > { %820 = dma.vmem_to_hbm [thread:$0]  (%p1471_p13), %s554_s10, 256, %s556_s15, %s534_s9, %s1270_s8, %s1271_s14, %s1272_s26  }
 0x31c   : > { %s570_s1 = sshll.u32 %s1545_s29, 4  ;;  %s539_s6 = scalar_lea.sflag [#allocation13], %s1515_s21  ;;  %s571_s1 = int_to_ptr.vmem [resolvable:$true] %s570_s1 }
 0x320   : > { %s569_s17 = scalar_lea.hbm %s1730_s3, %s812_s23  ;;  %s1121_s11 = scalar_lea.hbm %s1730_s3, 32 }
 0x321   : > { %s572_s4 = sshll.u32 %s569_s17, 4  ;;  %s573_s4 = int_to_ptr.hbm [resolvable:$true] %s572_s4 }
 0x322   : > { %s1115_s12 = sshra.s32 %s573_s4, 4  ;;  %s1116_s12 = int_to_ptr.hbm [resolvable:$true] %s1115_s12 }
 0x323   : > { %s1117_s24 = scalar_lea.hbm %s1116_s12, 16  ;;  %p1122_p13 = scmp.lt.s32.totalorder %s1116_s12, %s1730_s3 }
 0x324   : > { %p1118_p0 = scmp.ne.s32.totalorder %s1116_s12, %s1117_s24  ;;  %p1123_p4 = scmp.lt.s32.totalorder %s1121_s11, %s1117_s24 }
 0x326   : > { %p1119_p10 = pnand %p1118_p0, %p1480_p5  ;;  %p1124_p1 = por %p1123_p4, %p1122_p13 }
 0x328   : > { %p1120_p12 = pneg %p1119_p10 }
 0x32a   : > { %p1125_p6 = pnand %p1124_p1, %p1120_p12 }
 0x32c   : > { %1128 = shalt.err (!%p1125_p6)
}
 0x32d   : > { %821 = dma.vmem_to_hbm [thread:$0]  (%p1480_p5), %s571_s1, 256, %s573_s4, %s539_s6, %s1270_s8, %s1270_s8, %s1272_s26  }
 0x32e PF: > { %s1731_s21 = sld [smem:[#allocation19_spill]]  ;;  %p842_p9 = scmp.ge.s32.totalorder %s1259_s28, 2 }
 0x330   : > { %p835_p3 = pnand %p842_p9, %p1486_p7 }
 0x332   : > { %p836_p2 = pneg %p835_p3 }
 0x334   : > { %s587_s23 = sand.u32 1, %s1731_s21  }
 0x335   : > { %s588_s9 = scalar_lea.sflag [#allocation7], %s587_s23 }
 0x336   : > { %1198 = dma.done.wait (%p836_p2), %s588_s9, 256  }
 0x337   : > { %1200 = vsyncadd (%p836_p2), %s588_s9, 4294967040  ;;  %s1733_s25 = sld [smem:[#allocation22_spill]]  ;;  %p838_p11 = pnand %p842_p9, %p1493_p8 }
 0x339   : > { %p839_p0 = pneg %p838_p11 }
 0x33d   : > { %s597_s20 = sand.u32 1, %s1733_s25  }
 0x33e   : > { %s598_s30 = scalar_lea.sflag [#allocation13], %s597_s20 }
 0x33f   : > { %1202 = dma.done.wait (%p839_p0), %s598_s30, 256  }
 0x340   : > { %1204 = vsyncadd (%p839_p0), %s598_s30, 4294967040  ;;  %s27_s28 = sadd.s32 1, %s1259_s28   ;;  %s1736_s26 = sld [smem:[#allocation20_spill]] }
 0x341   : > { %p1619_p5 = scmp.ge.s32.totalorder %s27_s28, 8   ;;  %s1737_s17 = sld [smem:[#allocation30_spill]] }
 0x342   : > { %s1738_s5 = sld [smem:[#allocation21_spill]]  ;;  %s1745_s15 = smov %s1211_s16 }
 0x343   : > { %s1739_s20 = sld [smem:[#allocation27_spill]]  ;;  %s1747_s18 = smov %s1223_s19 }
 0x344   : > { %s1740_s1 = sld [smem:[#allocation23_spill]]  ;;  %s1749_s21 = smov %s1235_s22 }
 0x345   : > { %s1741_s23 = sld [smem:[#allocation29_spill]]  ;;  %s1751_s25 = smov %s1255_s27 }
 0x346   : > { %s1742_s24 = sld [smem:[#allocation25_spill]]  ;;  %s1746_s16 = smov %s1736_s26 }
 0x347   : > { %s1743_s4 = sld [smem:[#allocation26_spill]] }
 0x348   : > { %s1744_s6 = sld [smem:[#allocation28_spill]]  ;;  %s1748_s19 = smov %s1738_s5 }
 0x34a   : > { %s1750_s22 = smov %s1740_s1  ;;  %26 = sbr.rel (!%p1619_p5) target bundleno = 18 (0x12), region = 126 }
 0x34d   : > { %s1752_s26 = smov %s1743_s4 }
 0x34e   : > { %s1753_s27 = smov %s1744_s6 }
 0x34f   :  { %604 = vsyncpa [#allocation6], 1 }
 0x350   :  { %606 = vsyncpa [#allocation6 + $0x1], 1 }
 0x351   :  { %607 = vsyncpa [#allocation9], 1 }
 0x352   :  { %609 = vsyncpa [#allocation9 + $0x1], 1 }
 0x353   :  { %610 = vsyncpa [#allocation7], 1 }
 0x354   :  { %612 = vsyncpa [#allocation7 + $0x1], 1 }
 0x355   :  { %613 = vsyncpa [#allocation13], 1 }
 0x356   :  { %615 = vsyncpa [#allocation13 + $0x1], 1 }

</bundles_post_ra>
